<compile_context>
chip_gen: v7x
topology: tpu7x:2x2x1
jax: 0.10.0
libtpu: 0.0.40
codegen_flags: <defaults>
</compile_context>

<pallas_src>
import jax
import jax.numpy as jnp
from jax.experimental import pallas as pl
from jax.experimental.pallas import tpu as pltpu


def _round_up(x, m):
    return ((x + m - 1) // m) * m


def _vmem_capacity_bytes():
    try:
        return int(pltpu.get_tpu_info().vmem_capacity_bytes)
    except Exception:
        return 64 << 20  # conservative fallback (v7x per-core VMEM)


def _pick_batch_tile(B, S, h1, h2, out_cols, vmem_budget):
    """Pick the batch tile TB: big enough to amortize per-step overhead, small
    enough to fit the per-generation VMEM budget, multiple of 8, and leaving
    >= 2 grid steps on large batches so both TensorCores get work."""
    lane = 128
    s_lane = _round_up(max(S, 1), lane)
    o_lane = _round_up(max(out_cols, 1), lane)
    h1_lane = _round_up(max(h1, 1), lane)
    h2_lane = _round_up(max(h2, 1), lane)

    # VMEM-resident weights/biases (lane/sublane padded, x2 buffering slack).
    fixed = 2 * 4 * (
        _round_up(S, 8) * h1_lane
        + _round_up(h1, 8) * h2_lane
        + _round_up(h2, 8) * o_lane
        + 3 * 8 * max(h1_lane, h2_lane, o_lane)
    )
    budget = max(vmem_budget - fixed, 1 << 20)

    # f32 VMEM bytes per batch row: double-buffered x tile + double-buffered
    # output tile + lane-padded in-kernel intermediates (h1, h2, y).
    per_row = 4 * (2 * s_lane + 2 * o_lane + h1_lane + h2_lane + o_lane)
    tb_vmem = max(budget // per_row, 8)

    # Want >= ~4 MiB of real HBM traffic per grid step (x read + y write).
    tb_traffic = max(pl.cdiv(4 << 20, 4 * (S + out_cols)), 8)

    tb = min(tb_traffic, tb_vmem)
    if B >= 16:
        tb = min(tb, _round_up(pl.cdiv(B, 2), 8))  # keep >= 2 grid steps (megacore)
    tb = min(tb, _round_up(B, 8))
    return max(8, (tb // 8) * 8)


def _decoder_kernel(x_ref, w1_ref, b1_ref, w2_ref, b2_ref, w3_ref, b3_ref, o_ref):
    x = x_ref[...]                                                     # (TB, S)

    # learn_features: Linear(n_sensors, 40) + ReLU   (BN1 folded into w2/b2)
    h = jnp.dot(x, w1_ref[...], preferred_element_type=jnp.float32)   # (TB, 40)
    h = jnp.maximum(h + b1_ref[...], 0.0)

    # dropout(p=0.1, training=False) -> identity in eval mode
    # TODO(synk): training-mode dropout (pltpu.prng_* mask) intentionally omitted.

    # learn_coef: Linear(40, 45) + ReLU   (BN2 folded into w3/b3)
    h = jnp.dot(h, w2_ref[...], preferred_element_type=jnp.float32)   # (TB, 45)
    h = jnp.maximum(h + b2_ref[...], 0.0)

    # learn_dictionary: Linear(45, out)
    y = jnp.dot(h, w3_ref[...], preferred_element_type=jnp.float32)   # (TB, out)
    o_ref[...] = (y + b3_ref[...]).astype(o_ref.dtype)


def shallow_decoder_drop_forward(x_ncl, params, *, tb=None):
    """x_ncl: (N, 1, n_sensors) float32, like the PyTorch module's input."""
    B, C, S = x_ncl.shape
    assert C == 1, "BatchNorm1d(1) requires channel dim == 1"
    x2d = x_ncl.reshape(B, S).astype(jnp.float32)

    # --- fold eval-mode BatchNorm1d(1) into downstream weights/biases ---
    eps = 1e-5
    scale1 = params["bn1_gamma"] / jnp.sqrt(params["bn1_var"] + eps)
    shift1 = params["bn1_beta"] - params["bn1_mean"] * scale1
    scale2 = params["bn2_gamma"] / jnp.sqrt(params["bn2_var"] + eps)
    shift2 = params["bn2_beta"] - params["bn2_mean"] * scale2

    w1 = params["w1t"].astype(jnp.float32)
    b1 = params["b1"].astype(jnp.float32)
    # (relu(.)*s1 + t1) @ W2 + b2 == relu(.) @ (s1*W2) + (b2 + t1*colsum(W2))
    w2 = (params["w2t"] * scale1).astype(jnp.float32)
    b2 = (params["b2"] + shift1 * jnp.sum(params["w2t"], axis=0, keepdims=True)).astype(jnp.float32)
    w3 = (params["w3t"] * scale2).astype(jnp.float32)
    b3 = (params["b3"] + shift2 * jnp.sum(params["w3t"], axis=0, keepdims=True)).astype(jnp.float32)

    h1, h2, out_cols = w1.shape[1], w2.shape[1], w3.shape[1]

    # --- adaptive batch tile + VMEM limit (per-generation) ---
    vmem_cap = _vmem_capacity_bytes()
    if tb is None:
        TB = _pick_batch_tile(B, S, h1, h2, out_cols, int(vmem_cap * 0.6))
    else:
        TB = max(8, _round_up(min(tb, _round_up(B, 8)), 8))
    grid = (pl.cdiv(B, TB),)  # ragged final block handled by Pallas (no batch pad/slice)

    const = lambda i: (0, 0)  # weights/biases stay VMEM-resident across the grid

    out2d = pl.pallas_call(
        _decoder_kernel,
        out_shape=jax.ShapeDtypeStruct((B, out_cols), jnp.float32),
        grid=grid,
        in_specs=[
            pl.BlockSpec((TB, S), lambda i: (i, 0)),     # x tile
            pl.BlockSpec((S, h1), const),                # W1
            pl.BlockSpec((1, h1), const),                # b1
            pl.BlockSpec((h1, h2), const),               # W2 (BN1 folded)
            pl.BlockSpec((1, h2), const),                # b2 (BN1 folded)
            pl.BlockSpec((h2, out_cols), const),         # W3 (BN2 folded)
            pl.BlockSpec((1, out_cols), const),          # b3 (BN2 folded)
        ],
        out_specs=pl.BlockSpec((TB, out_cols), lambda i: (i, 0)),  # full-dim cols: no pad/slice
        compiler_params=pltpu.CompilerParams(
            dimension_semantics=("parallel",),
            vmem_limit_bytes=int(vmem_cap * 0.9)),
    )(x2d, w1, b1, w2, b2, w3, b3)

    return out2d.reshape(B, 1, out_cols)


def init_params(key, n_sensors, outputlayer_size):
    """Deterministic init mirroring the module: xavier_normal weights, zero biases,
    default BatchNorm1d stats (gamma=1, beta=0, running_mean=0, running_var=1)."""
    k1, k2, k3 = jax.random.split(key, 3)

    def xavier_normal(k, fan_in, fan_out):
        std = (2.0 / (fan_in + fan_out)) ** 0.5
        # stored pre-transposed as (in, out)
        return (std * jax.random.normal(k, (fan_in, fan_out))).astype(jnp.float32)

    return {
        "w1t": xavier_normal(k1, n_sensors, 40),
        "b1": jnp.zeros((1, 40), jnp.float32),
        "w2t": xavier_normal(k2, 40, 45),
        "b2": jnp.zeros((1, 45), jnp.float32),
        "w3t": xavier_normal(k3, 45, outputlayer_size),
        "b3": jnp.zeros((1, outputlayer_size), jnp.float32),
        "bn1_gamma": jnp.float32(1.0), "bn1_beta": jnp.float32(0.0),
        "bn1_mean": jnp.float32(0.0), "bn1_var": jnp.float32(1.0),
        "bn2_gamma": jnp.float32(1.0), "bn2_beta": jnp.float32(0.0),
        "bn2_mean": jnp.float32(0.0), "bn2_var": jnp.float32(1.0),
    }


def _reference_forward(x_ncl, params):
    """Plain-JAX reference (eval-mode semantics) for a correctness check."""
    eps = 1e-5
    B, _, S = x_ncl.shape
    x = x_ncl.reshape(B, S)
    h = jnp.maximum(x @ params["w1t"] + params["b1"], 0.0)
    h = params["bn1_gamma"] * (h - params["bn1_mean"]) / jnp.sqrt(params["bn1_var"] + eps) + params["bn1_beta"]
    h = jnp.maximum(h @ params["w2t"] + params["b2"], 0.0)
    h = params["bn2_gamma"] * (h - params["bn2_mean"]) / jnp.sqrt(params["bn2_var"] + eps) + params["bn2_beta"]
    y = h @ params["w3t"] + params["b3"]
    return y.reshape(B, 1, -1)


if __name__ == "__main__":
    key = jax.random.PRNGKey(0)
    n_sensors = 16
    outputlayer_size = 64
    batch = 8

    kx, kp = jax.random.split(key)
    x = jax.random.normal(kx, (batch, 1, n_sensors), dtype=jnp.float32)
    # make BN stats non-trivial so the fold is actually exercised
    params = init_params(kp, n_sensors, outputlayer_size)
    params["bn1_gamma"] = jnp.float32(1.3)
    params["bn1_beta"] = jnp.float32(-0.2)
    params["bn1_mean"] = jnp.float32(0.05)
    params["bn1_var"] = jnp.float32(0.8)
    params["bn2_gamma"] = jnp.float32(0.9)
    params["bn2_beta"] = jnp.float32(0.1)
    params["bn2_mean"] = jnp.float32(-0.03)
    params["bn2_var"] = jnp.float32(1.2)

    out = shallow_decoder_drop_forward(x, params)
    out = jax.block_until_ready(out)

    ref = _reference_forward(x, params)
    assert out.shape == (batch, 1, outputlayer_size)
    assert jnp.allclose(out, ref, atol=1e-4, rtol=1e-4), "mismatch vs reference"

    print("KERNEL_OK")
</pallas_src>

<mosaic_0001>
module attributes {stable_mosaic.version = 11 : i64} {
  func.func @_decoder_kernel(%arg0: i32, %arg1: memref<8x16xf32, #tpu.memory_space<vmem>>, %arg2: memref<16x40xf32, #tpu.memory_space<vmem>>, %arg3: memref<1x40xf32, #tpu.memory_space<vmem>>, %arg4: memref<40x45xf32, #tpu.memory_space<vmem>>, %arg5: memref<1x45xf32, #tpu.memory_space<vmem>>, %arg6: memref<45x64xf32, #tpu.memory_space<vmem>>, %arg7: memref<1x64xf32, #tpu.memory_space<vmem>>, %arg8: memref<8x64xf32, #tpu.memory_space<vmem>>) attributes {dimension_semantics = [#tpu.dimension_semantics<parallel>], iteration_bounds = array<i64: 1>, scalar_prefetch = 0 : i64, scratch_operands = 0 : i64, tpu.core_type = #tpu.core_type<tc>, window_params = [{transform_indices = @transform_0, window_bounds = array<i64: 8, 16>}, {pipeline_mode = #tpu.pipeline_mode<synchronous>, transform_indices = @transform_1, window_bounds = array<i64: 16, 40>}, {pipeline_mode = #tpu.pipeline_mode<synchronous>, transform_indices = @transform_2, window_bounds = array<i64: 1, 40>}, {pipeline_mode = #tpu.pipeline_mode<synchronous>, transform_indices = @transform_3, window_bounds = array<i64: 40, 45>}, {pipeline_mode = #tpu.pipeline_mode<synchronous>, transform_indices = @transform_4, window_bounds = array<i64: 1, 45>}, {pipeline_mode = #tpu.pipeline_mode<synchronous>, transform_indices = @transform_5, window_bounds = array<i64: 45, 64>}, {pipeline_mode = #tpu.pipeline_mode<synchronous>, transform_indices = @transform_6, window_bounds = array<i64: 1, 64>}, {transform_indices = @transform_7, window_bounds = array<i64: 8, 64>}]} {
    %c0 = arith.constant 0 : index
    %c0_0 = arith.constant 0 : index
    %0 = vector.load %arg1[%c0, %c0_0] : memref<8x16xf32, #tpu.memory_space<vmem>>, vector<8x16xf32>
    %c0_1 = arith.constant 0 : index
    %c0_2 = arith.constant 0 : index
    %1 = vector.load %arg2[%c0_1, %c0_2] : memref<16x40xf32, #tpu.memory_space<vmem>>, vector<16x40xf32>
    %cst = arith.constant dense<0.000000e+00> : vector<8x40xf32>
    %2 = tpu.matmul %0, %1, %cst {dimension_numbers = #tpu.dot_dimension_numbers<[1], [0], [0], [1], [0, 0, 1, 1], [], []>} : vector<8x16xf32>, vector<16x40xf32>, vector<8x40xf32> -> vector<8x40xf32>
    %c0_3 = arith.constant 0 : index
    %c0_4 = arith.constant 0 : index
    %3 = vector.load %arg3[%c0_3, %c0_4] : memref<1x40xf32, #tpu.memory_space<vmem>>, vector<1x40xf32>
    %4 = vector.broadcast %3 : vector<1x40xf32> to vector<8x40xf32>
    %5 = arith.addf %2, %4 : vector<8x40xf32>
    %cst_5 = arith.constant 0.000000e+00 : f32
    %6 = vector.broadcast %cst_5 : f32 to vector<8x40xf32>
    %7 = arith.maximumf %5, %6 : vector<8x40xf32>
    %c0_6 = arith.constant 0 : index
    %c0_7 = arith.constant 0 : index
    %8 = vector.load %arg4[%c0_6, %c0_7] : memref<40x45xf32, #tpu.memory_space<vmem>>, vector<40x45xf32>
    %cst_8 = arith.constant dense<0.000000e+00> : vector<8x45xf32>
    %9 = tpu.matmul %7, %8, %cst_8 {dimension_numbers = #tpu.dot_dimension_numbers<[1], [0], [0], [1], [0, 0, 1, 1], [], []>} : vector<8x40xf32>, vector<40x45xf32>, vector<8x45xf32> -> vector<8x45xf32>
    %c0_9 = arith.constant 0 : index
    %c0_10 = arith.constant 0 : index
    %10 = vector.load %arg5[%c0_9, %c0_10] : memref<1x45xf32, #tpu.memory_space<vmem>>, vector<1x45xf32>
    %11 = vector.broadcast %10 : vector<1x45xf32> to vector<8x45xf32>
    %12 = arith.addf %9, %11 : vector<8x45xf32>
    %cst_11 = arith.constant 0.000000e+00 : f32
    %13 = vector.broadcast %cst_11 : f32 to vector<8x45xf32>
    %14 = arith.maximumf %12, %13 : vector<8x45xf32>
    %c0_12 = arith.constant 0 : index
    %c0_13 = arith.constant 0 : index
    %15 = vector.load %arg6[%c0_12, %c0_13] : memref<45x64xf32, #tpu.memory_space<vmem>>, vector<45x64xf32>
    %cst_14 = arith.constant dense<0.000000e+00> : vector<8x64xf32>
    %16 = tpu.matmul %14, %15, %cst_14 {dimension_numbers = #tpu.dot_dimension_numbers<[1], [0], [0], [1], [0, 0, 1, 1], [], []>} : vector<8x45xf32>, vector<45x64xf32>, vector<8x64xf32> -> vector<8x64xf32>
    %c0_15 = arith.constant 0 : index
    %c0_16 = arith.constant 0 : index
    %17 = vector.load %arg7[%c0_15, %c0_16] : memref<1x64xf32, #tpu.memory_space<vmem>>, vector<1x64xf32>
    %18 = vector.broadcast %17 : vector<1x64xf32> to vector<8x64xf32>
    %19 = arith.addf %16, %18 : vector<8x64xf32>
    %c0_17 = arith.constant 0 : index
    %c0_18 = arith.constant 0 : index
    %20 = vector.load %arg8[%c0_17, %c0_18] : memref<8x64xf32, #tpu.memory_space<vmem>>, vector<8x64xf32>
    tpu.vector_store %arg8[%c0_17, %c0_18], %19 {strides = array<i32>} : memref<8x64xf32, #tpu.memory_space<vmem>>, vector<8x64xf32>,
    return
  }
  func.func @transform_0(%arg0: i32) -> (i32, i32) {
    %c0_i32 = arith.constant 0 : i32
    %c0_i32_0 = arith.constant 0 : i32
    return %arg0, %c0_i32 : i32, i32
  }
  func.func @transform_1(%arg0: i32) -> (i32, i32) {
    %c0_i32 = arith.constant 0 : i32
    %c0_i32_0 = arith.constant 0 : i32
    %c0_i32_1 = arith.constant 0 : i32
    return %c0_i32, %c0_i32_0 : i32, i32
  }
  func.func @transform_2(%arg0: i32) -> (i32, i32) {
    %c0_i32 = arith.constant 0 : i32
    %c0_i32_0 = arith.constant 0 : i32
    %c0_i32_1 = arith.constant 0 : i32
    return %c0_i32, %c0_i32_0 : i32, i32
  }
  func.func @transform_3(%arg0: i32) -> (i32, i32) {
    %c0_i32 = arith.constant 0 : i32
    %c0_i32_0 = arith.constant 0 : i32
    %c0_i32_1 = arith.constant 0 : i32
    return %c0_i32, %c0_i32_0 : i32, i32
  }
  func.func @transform_4(%arg0: i32) -> (i32, i32) {
    %c0_i32 = arith.constant 0 : i32
    %c0_i32_0 = arith.constant 0 : i32
    %c0_i32_1 = arith.constant 0 : i32
    return %c0_i32, %c0_i32_0 : i32, i32
  }
  func.func @transform_5(%arg0: i32) -> (i32, i32) {
    %c0_i32 = arith.constant 0 : i32
    %c0_i32_0 = arith.constant 0 : i32
    %c0_i32_1 = arith.constant 0 : i32
    return %c0_i32, %c0_i32_0 : i32, i32
  }
  func.func @transform_6(%arg0: i32) -> (i32, i32) {
    %c0_i32 = arith.constant 0 : i32
    %c0_i32_0 = arith.constant 0 : i32
    %c0_i32_1 = arith.constant 0 : i32
    return %c0_i32, %c0_i32_0 : i32, i32
  }
  func.func @transform_7(%arg0: i32) -> (i32, i32) {
    %c0_i32 = arith.constant 0 : i32
    %c0_i32_0 = arith.constant 0 : i32
    return %arg0, %c0_i32 : i32, i32
  }
}

</mosaic_0001>

<bundles_post_ra>
// kernel: tpu_custom_call.1
= control target key start
LH: loop header
LB: loop body
LE: loop exit
PB: predicated region body
PF: predicated region fallthrough
CT: control target
= control target key end

     0   :  { %12 = vsyncpa [#allocation3], 0  ;;  %s700_s0 = inlined_call_operand.hbm [shape: f32[8,16], index: 0, kind: input, shape index: {}]   ;;  %s701_s1 = inlined_call_operand.hbm [shape: f32[16,40], index: 1, kind: input, shape index: {}]   ;;  %s702_s2 = inlined_call_operand.vmem [shape: f32[1,40], index: 2, kind: input, shape index: {}]   ;;  %s703_s3 = inlined_call_operand.hbm [shape: f32[40,45], index: 3, kind: input, shape index: {}]   ;;  %s704_s4 = inlined_call_operand.vmem [shape: f32[1,45], index: 4, kind: input, shape index: {}]   ;;  %s705_s5 = inlined_call_operand.hbm [shape: f32[45,64], index: 5, kind: input, shape index: {}]   ;;  %s706_s6 = inlined_call_operand.vmem [shape: f32[1,64], index: 6, kind: input, shape index: {}]   ;;  %s707_s7 = inlined_call_operand.hbm [shape: f32[8,64], index: 7, kind: output, shape index: {}]  }
   0x1   :  { %13 = vsyncpa [#allocation6], 0 }
   0x2   :  { %14 = vsyncpa [#allocation9], 0 }
   0x3   :  { %15 = vsyncpa [#allocation4], 0  ;;  %s568_s24 = smov [#allocation5]   ;;  %s450_s28 = scalar_lea.hbm %s701_s1, 256 }
   0x4   :  { %s31_s25 = sshll.u32 %s568_s24, 4  ;;  %p451_p0 = scmp.ne.s32.totalorder %s701_s1, %s450_s28  ;;  %s32_s25 = int_to_ptr.vmem [resolvable:$true] %s31_s25 }
   0x5   :  { %p454_p1 = scmp.lt.u32.totalorder %s450_s28, %s701_s1 }
   0x7   :  { %p456_p2 = pnand %p454_p1, %p451_p0 }
   0x9   :  { %459 = shalt.err (!%p456_p2)
}
   0xa   :  { %s460_s10 = scalar_lea.vmem %s32_s25, 256  ;;  %p465_p4 = scmp.lt.s32.totalorder %s32_s25, %s32_s25 }
   0xb   :  { %p461_p3 = scmp.ne.s32.totalorder %s32_s25, %s460_s10  ;;  %p466_p5 = scmp.lt.s32.totalorder %s460_s10, %s460_s10 }
   0xd   :  { %p467_p6 = por %p466_p5, %p465_p4 }
   0xf   :  { %p468_p7 = pnand %p467_p6, %p461_p3 }
  0x11   :  { %471 = shalt.err (!%p468_p7)
}
  0x12   :  { %s569_s11 = smov 128   ;;  %s570_s12 = smov 8  }
  0x13   :  { %37 = dma.hbm_to_vmem [thread:$0]  %s701_s1, 256, %s32_s25, [#allocation6], %s569_s11, %s569_s11, %s570_s12  }
  0x14   :  { %s571_s15 = smov [#allocation2]   ;;  %s572_s17 = smov [#allocation7]  }
  0x15   :  { %s22_s16 = sshll.u32 %s571_s15, 4  ;;  %s45_s18 = sshll.u32 %s572_s17, 4  ;;  %s23_s16 = int_to_ptr.vmem [resolvable:$true] %s22_s16  ;;  %s46_s18 = int_to_ptr.vmem [resolvable:$true] %s45_s18 }
  0x16   :  { %s472_s21 = scalar_lea.hbm %s700_s0, 128 }
  0x17   :  { %p473_p8 = scmp.ne.s32.totalorder %s700_s0, %s472_s21  ;;  %p476_p9 = scmp.lt.u32.totalorder %s472_s21, %s700_s0 }
  0x19   :  { %p478_p10 = pnand %p476_p9, %p473_p8 }
  0x1b   :  { %481 = shalt.err (!%p478_p10)
}
  0x1c   :  { %s482_s1 = scalar_lea.vmem %s23_s16, 128  ;;  %p487_p12 = scmp.lt.s32.totalorder %s23_s16, %s23_s16 }
  0x1d   :  { %p483_p11 = scmp.ne.s32.totalorder %s23_s16, %s482_s1  ;;  %p488_p13 = scmp.lt.s32.totalorder %s482_s1, %s482_s1 }
  0x1f   :  { %p489_p0 = por %p488_p13, %p487_p12 }
  0x21   :  { %p490_p1 = pnand %p489_p0, %p483_p11 }
  0x23   :  { %493 = shalt.err (!%p490_p1)
}
  0x24   :  { %25 = dma.hbm_to_vmem [thread:$0]  %s700_s0, 128, %s23_s16, [#allocation3]  }
  0x25   :  { %s494_s30 = scalar_lea.hbm %s703_s3, 640 }
  0x26   :  { %p495_p2 = scmp.ne.s32.totalorder %s703_s3, %s494_s30  ;;  %p498_p3 = scmp.lt.u32.totalorder %s494_s30, %s703_s3 }
  0x28   :  { %p500_p4 = pnand %p498_p3, %p495_p2 }
  0x2a   :  { %503 = shalt.err (!%p500_p4)
}
  0x2b   :  { %s504_s14 = scalar_lea.vmem %s46_s18, 640  ;;  %p509_p6 = scmp.lt.s32.totalorder %s46_s18, %s46_s18 }
  0x2c   :  { %p505_p5 = scmp.ne.s32.totalorder %s46_s18, %s504_s14  ;;  %p510_p7 = scmp.lt.s32.totalorder %s504_s14, %s504_s14 }
  0x2e   :  { %p511_p8 = por %p510_p7, %p509_p6 }
  0x30   :  { %p512_p9 = pnand %p511_p8, %p505_p5 }
  0x32   :  { %515 = shalt.err (!%p512_p9)
}
  0x33   :  { %51 = dma.hbm_to_vmem [thread:$0]  %s703_s3, 640, %s46_s18, [#allocation6], %s569_s11, %s569_s11, %s570_s12  }
  0x34   :  { %s573_s16 = smov [#allocation8]   ;;  %s516_s21 = scalar_lea.hbm %s705_s5, 768 }
  0x35   :  { %s59_s17 = sshll.u32 %s573_s16, 4  ;;  %p517_p10 = scmp.ne.s32.totalorder %s705_s5, %s516_s21  ;;  %s60_s17 = int_to_ptr.vmem [resolvable:$true] %s59_s17 }
  0x36   :  { %p520_p11 = scmp.lt.u32.totalorder %s516_s21, %s705_s5 }
  0x38   :  { %p522_p12 = pnand %p520_p11, %p517_p10 }
  0x3a   :  { %525 = shalt.err (!%p522_p12)
}
  0x3b   :  { %s526_s1 = scalar_lea.vmem %s60_s17, 768  ;;  %p531_p0 = scmp.lt.s32.totalorder %s60_s17, %s60_s17 }
  0x3c   :  { %p527_p13 = scmp.ne.s32.totalorder %s60_s17, %s526_s1  ;;  %p532_p1 = scmp.lt.s32.totalorder %s526_s1, %s526_s1 }
  0x3e   :  { %p533_p2 = por %p532_p1, %p531_p0 }
  0x40   :  { %p534_p3 = pnand %p533_p2, %p527_p13 }
  0x42   :  { %537 = shalt.err (!%p534_p3)
}
  0x43   :  { %65 = dma.hbm_to_vmem [thread:$0]  %s705_s5, 768, %s60_s17, [#allocation9], %s569_s11, %s569_s11, %s570_s12  }
  0x44   :  { %560 = dma.done.wait [#allocation3], 128  }
  0x45   :  { %561 = vsyncadd [#allocation3], 4294967168 }
  0x46   :  { %562 = dma.done.wait [#allocation6], 896  }
  0x47   :  { %563 = vsyncadd [#allocation6], 4294966400 }
  0x48   :  { %564 = dma.done.wait [#allocation9], 768  }
  0x49   :  { %565 = vsyncadd [#allocation9], 4294966528  ;;  %v574_v0 = vmov 0.0|0.0   ;;  %vm575_vm0 = vmmov 0   ;;  %v576_v1 = vmov 0.0   ;;  %v81_v2 = vld [vmem:[#allocation5] sm:$0xff] }
  0x4a   :  { %420 = vmatprep.subr.bf16.mxu1 %v574_v0  ;;  %389 = vmatprep.mubr.msk.f32.mxu1 %vm575_vm0, %v576_v1  ;;  %v82_v3 = vld [vmem:[#allocation5 + $0x8] sm:$0xff]  ;;  %v165_v5 = vld [vmem:[#allocation7] sm:$0xff]  ;;  %v166_v6 = vld [vmem:[#allocation7 + $0x8] sm:$0xff]  ;;  %vm90_vm1 = vcmask 130048   ;;  %vm177_vm2 = vcmask 326656   ;;  %vm269_vm3 = vcmask 1044480  }
  0x4b   :  { %429 = vmatprep.subr.bf16.mxu0 %v574_v0  ;;  %417 = vmatprep.mubr.msk.f32.mxu0 %vm575_vm0, %v576_v1  ;;  %v421_v4 = vpack.c.bf16 %v82_v3, %v81_v2  ;;  %v80_v7 = vld [vmem:[#allocation2] sm:$0xff]  ;;  %v424_v8 = vpack.c.bf16 %v166_v6, %v165_v5  ;;  %v167_v9 = vld [vmem:[#allocation7 + $0x10] sm:$0xff]  ;;  %v168_v10 = vld [vmem:[#allocation7 + $0x18] sm:$0xff]  ;;  %vm577_vm4 = vmmov 1   ;;  %vm265_vm6 = vcmask 367616   ;;  %s578_s28 = smov [#allocation10]  }
  0x4c   :  { %v427_v11 = vpack.c.bf16 %v168_v10, %v167_v9  ;;  %v169_v12 = vld [vmem:[#allocation7 + $0x20] sm:$0xff]  ;;  %v252_v13 = vld [vmem:[#allocation8] sm:$0xff]  ;;  %v253_v14 = vld [vmem:[#allocation8 + $0x8] sm:$0xff]  ;;  %s351_s29 = sshll.u32 %s578_s28, 4  ;;  %vm343_vm7 = vcmask 523264   ;;  %s352_s29 = int_to_ptr.vmem [resolvable:$true] %s351_s29 }
  0x4d   :  { %422 = vmatpush3.bf16.msra.mxu1 %v421_v4  ;;  %v254_v15 = vld [vmem:[#allocation8 + $0x10] sm:$0xff]  ;;  %v430_v16 = vpack.c.bf16 %v253_v14, %v252_v13  ;;  %v255_v17 = vld [vmem:[#allocation8 + $0x18] sm:$0xff]  ;;  %v362_v19 = vld [vmem:[%s702_s2] ss:$0 sm:$0xff]  ;;  %s538_s30 = scalar_lea.vmem %s352_s29, 128  ;;  %p543_p5 = scmp.lt.s32.totalorder %s352_s29, %s352_s29 }
  0x4e   :  { %423 = vmatprep.subr.bf16.mxu1 %v574_v0  ;;  %v433_v18 = vpack.c.bf16 %v255_v17, %v254_v15  ;;  %v256_v24 = vld [vmem:[#allocation8 + $0x20] sm:$0xff]  ;;  %v257_v25 = vld [vmem:[#allocation8 + $0x28] sm:$0x1f]  ;;  %vm437_vm5 = vmpackc.low %vm269_vm3, %vm577_vm4  ;;  %p539_p4 = scmp.ne.s32.totalorder %s352_s29, %s538_s30  ;;  %p544_p6 = scmp.lt.s32.totalorder %s538_s30, %s538_s30 }
  0x4f   :  { %431 = vmatpush3.bf16.msra.mxu0 %v430_v16  ;;  %v436_v26 = vpack.c.bf16 %v257_v25, %v256_v24  ;;  %v364_v27 = vld [vmem:[%s704_s4] ss:$0 sm:$0xff] }
  0x50   :  { %390 = vmatmul.mubr.msk.f32.vlgmr.msra.gmra.mrb[0].mxu1 %vm90_vm1, %v80_v7  ;;  %432 = vmatprep.subr.bf16.mxu0 %v574_v0  ;;  %v366_v32 = vld [vmem:[%s706_s6] ss:$0 sm:$0xff]  ;;  %p545_p7 = por %p544_p6, %p543_p5 }
  0x51   :  { %425 = vmatpush3.bf16.msra.mxu1 %v424_v8  ;;  %402 = vmatprep.mubr.msk.f32.mxu1 %vm575_vm0, %v576_v1 }
  0x52   :  { %426 = vmatprep.subr.bf16.mxu1 %v574_v0  ;;  %p546_p8 = pnand %p545_p7, %p539_p4 }
  0x53   :  { %434 = vmatpush3.bf16.msra.mxu0 %v433_v18 }
  0x54   :  { %435 = vmatprep.subr.bf16.mxu0 %v574_v0 }
  0x55   :  { %428 = vmatpush3.bf16.msra.mxu1 %v427_v11 }
  0x56   :  { %400 = vmatprep.subr.mxu1 %v576_v1 }
  0x57   :  { %438 = vmatpush3.bf16.msk.msra.mxu0 %vm437_vm5, %v436_v26 }
  0x59   :  { %401 = vmatpush3.msra.mxu1 %v169_v12 }
 0x123   :  { %v160_v20 = vpop.f32.mrb[0].mxu1 }
 0x124   :  { %v161_v21 = vadd.f32 %v362_v19, %v160_v20  ;;  %v391_v22 = vpop.f32.mrb[1].mxu1 }
 0x126   :  { %v164_v23 = vmax.f32 %v161_v21, 0.0 }
 0x128   :  { %403 = vmatmul.mubr.msk.f32.vlgmr.msra.gmra.mrb[2].mxu1 %vm177_vm2, %v164_v23 }
 0x1fb   :  { %v247_v28 = vpop.f32.mrb[2].mxu1 }
 0x1fc   :  { %v248_v29 = vadd.f32 %v364_v27, %v247_v28  ;;  %v404_v30 = vpop.f32.mrb[3].mxu1 }
 0x1fe   :  { %v251_v31 = vmax.f32 %v248_v29, 0.0 }
 0x200   :  { %418 = vmatmul.mubr.msk.f32.vlgmr.msra.gmra.mrb[0].mxu0 %vm265_vm6, %v251_v31 }
 0x2d3   :  { %v339_v33 = vpop.f32.mrb[0].mxu0 }
 0x2d4   :  { %v340_v34 = vadd.f32 %v366_v32, %v339_v33  ;;  %v419_v35 = vpop.f32.mrb[1].mxu0 }
 0x2d6   :  { %344 = vst.msk [vmem:[#allocation10] sm:$0xff] %vm343_vm7, %v340_v34 }
 0x2d7   :  { %549 = shalt.err (!%p546_p8)
}
 0x2d8   :  { %s550_s9 = scalar_lea.hbm %s707_s7, 128 }
 0x2d9   :  { %p551_p9 = scmp.ne.s32.totalorder %s707_s7, %s550_s9  ;;  %p554_p10 = scmp.lt.u32.totalorder %s550_s9, %s707_s7 }
 0x2db   :  { %p556_p11 = pnand %p554_p10, %p551_p9 }
 0x2dd   :  { %559 = shalt.err (!%p556_p11)
}
 0x2de   :  { %354 = dma.vmem_to_hbm [thread:$0]  %s352_s29, 128, %s707_s7, [#allocation4]  }
 0x2df   :  { %566 = dma.done.wait [#allocation4], 128  }
 0x2e0   :  { %567 = vsyncadd [#allocation4], 4294967168 }
 0x2e1   :  { %358 = vsyncpa [#allocation3], 1 }
 0x2e2   :  { %359 = vsyncpa [#allocation6], 1 }
 0x2e3   :  { %360 = vsyncpa [#allocation9], 1 }
 0x2e4   :  { %361 = vsyncpa [#allocation4], 1 }

</bundles_post_ra>
